<compile_context>
chip_gen: v6e
topology: v6e:2x2x1
jax: 0.10.0
libtpu: 0.0.40
codegen_flags: <defaults>
</compile_context>

<pallas_src>
import functools

import jax
import jax.numpy as jnp
from jax import lax
from jax.experimental import pallas as pl
from jax.experimental.pallas import tpu as pltpu

LANES = 128
ACC_SUBLANES = 8                 # accumulator kept as full (8,128) vregs
MAX_TILE_BYTES = 1 << 20         # ~1 MiB per input buffer per pipeline stage
VMEM_LIMIT_BYTES = 32 * 1024 * 1024


def _min_sublane(dtype):
    """Sublane multiple required for a block's second-to-last dim."""
    size = jnp.dtype(dtype).itemsize
    if size >= 4:
        return 8
    if size == 2:
        return 16
    return 32


def _num_tensorcores():
    """2 on multi-TensorCore devices (v4/v5p megacore, v7x), else 1."""
    try:
        kind = jax.devices()[0].device_kind.lower()
    except Exception:
        return 1
    if any(tag in kind for tag in ("v4", "v5p", "v7", "tpu7")):
        return 2
    return 1


def _dice_kernel(pred_ref, target_ref, out_ref, acc_ref, *,
                 tile_rows, steps_per_core, full_blocks, rows_full, lane_rem,
                 emit_masked):
    """Accumulates partials of sum(sigmoid(p)*t), sum(sigmoid(p)), sum(t).

    acc_ref: VMEM (3, 8, 128) f32 — row 0: intersection, 1: pred sum, 2: target sum.
    out_ref: (1, 3, 128) per-core lane-partial slab, written once in the epilogue.
    """
    c = pl.program_id(0)              # core-split axis ("parallel")
    i = pl.program_id(1)              # reduction axis ("arbitrary")
    steps = pl.num_programs(1)
    b = c * steps_per_core + i        # logical (unclamped) block index

    @pl.when(i == 0)
    def _():
        acc_ref[...] = jnp.zeros_like(acc_ref)

    groups = tile_rows // ACC_SUBLANES

    def sigmoid(x):
        # Single EUP push per element (tanh) instead of exp + reciprocal.
        return 0.5 * jnp.tanh(0.5 * x) + 0.5

    def accumulate(p, t):
        # Fold tile_rows rows onto 8 sublanes with whole-vreg VPU adds; the reshape
        # keeps (8,128) tiles intact so it is metadata only. Cross-lane reduction is
        # deferred to the epilogue.
        p3 = p.reshape(groups, ACC_SUBLANES, LANES)
        t3 = t.reshape(groups, ACC_SUBLANES, LANES)
        acc_ref[0] += jnp.sum(p3 * t3, axis=0)
        acc_ref[1] += jnp.sum(p3, axis=0)
        acc_ref[2] += jnp.sum(t3, axis=0)

    def fast_path():
        p = sigmoid(pred_ref[...].astype(jnp.float32))
        t = target_ref[...].astype(jnp.float32)
        accumulate(p, t)

    def masked_path():
        # Row-granular validity (+ a lane compare only for the single ragged row).
        # Masks: (a) zero-padded lanes of the ragged row (sigmoid(0)=0.5 must not
        # leak into the pred sum), (b) uninitialized VMEM rows of a partial edge
        # block, (c) clamped duplicate blocks when the grid overshoots. Row indices
        # stay < #rows, so no int32 overflow for any realistic tensor.
        row = b * tile_rows + lax.broadcasted_iota(jnp.int32, (tile_rows, LANES), 0)
        valid = row < rows_full
        if lane_rem:
            lane = lax.broadcasted_iota(jnp.int32, (tile_rows, LANES), 1)
            valid = valid | ((row == rows_full) & (lane < lane_rem))
        # Selects (not multiply-by-mask): OOB VMEM garbage may be NaN/Inf.
        p = jnp.where(valid, sigmoid(pred_ref[...].astype(jnp.float32)), 0.0)
        t = jnp.where(valid, target_ref[...].astype(jnp.float32), 0.0)
        accumulate(p, t)

    if not emit_masked:
        fast_path()
    elif full_blocks > 0:
        @pl.when(b < full_blocks)
        def _():
            fast_path()

        @pl.when(b >= full_blocks)
        def _():
            masked_path()
    else:
        masked_path()

    @pl.when(i == steps - 1)
    def _():
        # Sublane reduction (XLU slot) is free under the DMA-bound final step; each
        # core writes its lane-dense (1, 3, 128) partial slab exactly once.
        out_ref[...] = jnp.sum(acc_ref[...], axis=1).reshape(1, 3, LANES)


def dice(pred, target, smooth=1.0):
    """Pallas equivalent of Dice.forward(pred, target).

    Inputs are consumed in their native dtype (pass bf16 logits / int masks as-is;
    the f32 cast happens in VMEM) — do not pre-cast in the caller.
    """
    p = pred.reshape(-1)
    t = target.reshape(-1)
    n = p.shape[0]

    # Lane-alignment pad only (makes the reshape to (-1, 128) free for aligned
    # sizes); padded slots are masked out inside the kernel.
    n_lanes = pl.cdiv(n, LANES) * LANES
    if n_lanes != n:
        p = jnp.pad(p, (0, n_lanes - n))
        t = jnp.pad(t, (0, n_lanes - n))
    rows = n_lanes // LANES

    sub = max(_min_sublane(p.dtype), _min_sublane(t.dtype))
    itemsize = max(jnp.dtype(p.dtype).itemsize, jnp.dtype(t.dtype).itemsize)
    max_tile_rows = max(sub, (MAX_TILE_BYTES // (LANES * itemsize)) // sub * sub)
    tile_rows = min(max_tile_rows, pl.cdiv(rows, sub) * sub)

    total_blocks = pl.cdiv(rows, tile_rows)
    num_cores = max(1, min(_num_tensorcores(), total_blocks))
    steps_per_core = pl.cdiv(total_blocks, num_cores)
    last_block = total_blocks - 1

    block_elems = tile_rows * LANES
    full_blocks = n // block_elems            # blocks with no invalid slot at all
    grid_blocks = num_cores * steps_per_core  # logical blocks the grid visits
    emit_masked = full_blocks < grid_blocks

    p2 = p.reshape(rows, LANES)
    t2 = t.reshape(rows, LANES)

    def in_map(c, i):
        # Clamp so the DMA never reads past the array; duplicated data is zeroed by
        # the in-kernel mask (its logical block index is >= full_blocks).
        return (jnp.minimum(c * steps_per_core + i, last_block), 0)

    def out_map(c, i):
        return (c, 0, 0)

    kernel = functools.partial(
        _dice_kernel,
        tile_rows=tile_rows,
        steps_per_core=steps_per_core,
        full_blocks=full_blocks,
        rows_full=n // LANES,
        lane_rem=n % LANES,
        emit_masked=emit_masked,
    )

    # TODO(synk): consider pipeline_mode=pl.Buffered(3) on the input specs once an
    # xprof trace confirms exposed DMA at step boundaries.
    partials = pl.pallas_call(
        kernel,
        out_shape=jax.ShapeDtypeStruct((num_cores, 3, LANES), jnp.float32),
        grid_spec=pltpu.PrefetchScalarGridSpec(
            num_scalar_prefetch=0,
            grid=(num_cores, steps_per_core),
            in_specs=[
                pl.BlockSpec((tile_rows, LANES), in_map),
                pl.BlockSpec((tile_rows, LANES), in_map),
            ],
            out_specs=pl.BlockSpec((1, 3, LANES), out_map),
            scratch_shapes=[pltpu.VMEM((3, ACC_SUBLANES, LANES), jnp.float32)],
        ),
        compiler_params=pltpu.CompilerParams(
            dimension_semantics=("parallel", "arbitrary"),
            vmem_limit_bytes=VMEM_LIMIT_BYTES,
        ),
    )(p2, t2)

    # Tiny epilogue in plain JAX (fuses with the scalar arithmetic below).
    sums = partials.sum(axis=(0, 2))          # (3,): intersection, pred sum, target sum
    smooth = jnp.float32(smooth)
    return (2.0 * sums[0] + smooth) / (sums[1] + sums[2] + smooth)


def _dice_ref(pred, target, smooth=1.0):
    p = jax.nn.sigmoid(pred.astype(jnp.float32)).reshape(-1)
    t = target.astype(jnp.float32).reshape(-1)
    inter = jnp.sum(p * t)
    return (2.0 * inter + smooth) / (jnp.sum(p) + jnp.sum(t) + smooth)


if __name__ == "__main__":
    key = jax.random.PRNGKey(0)
    k1, k2 = jax.random.split(key)

    # NCHW, matching the PyTorch module's typical segmentation-logit input.
    pred = jax.random.normal(k1, (2, 4, 16, 16), dtype=jnp.float32)
    target = (jax.random.uniform(k2, (2, 4, 16, 16)) > 0.5).astype(jnp.float32)

    out = dice(pred, target, smooth=1.0)
    out = jax.block_until_ready(out)

    ref = _dice_ref(pred, target, smooth=1.0)
    assert jnp.allclose(out, ref, rtol=1e-4, atol=1e-6), (out, ref)

    print("KERNEL_OK")
</pallas_src>

<mosaic_0001>
module attributes {stable_mosaic.version = 11 : i64} {
  func.func @_dice_kernel(%arg0: i32, %arg1: i32, %arg2: memref<16x128xf32, #tpu.memory_space<vmem>>, %arg3: memref<16x128xf32, #tpu.memory_space<vmem>>, %arg4: memref<1x3x128xf32, #tpu.memory_space<vmem>>, %arg5: memref<3x8x128xf32, #tpu.memory_space<vmem>>) attributes {dimension_semantics = [#tpu.dimension_semantics<parallel>, #tpu.dimension_semantics<arbitrary>], iteration_bounds = array<i64: 1, 1>, scalar_prefetch = 0 : i64, scratch_operands = 1 : i64, tpu.core_type = #tpu.core_type<tc>, window_params = [{transform_indices = @transform_0, window_bounds = array<i64: 16, 128>}, {transform_indices = @transform_1, window_bounds = array<i64: 16, 128>}, {transform_indices = @transform_2, window_bounds = array<i64: 1, 3, 128>}]} {
    %c0_i32 = arith.constant 0 : i32
    %0 = arith.cmpi eq, %arg1, %c0_i32 : i32
    %1 = arith.extui %0 : i1 to i32
    %c0_i32_0 = arith.constant 0 : i32
    %2 = arith.cmpi ne, %1, %c0_i32_0 : i32
    scf.if %2 {
      %cst_27 = arith.constant 0.000000e+00 : f32
      %39 = vector.broadcast %cst_27 : f32 to vector<3x8x128xf32>
      %c0_28 = arith.constant 0 : index
      %c0_29 = arith.constant 0 : index
      %c0_30 = arith.constant 0 : index
      %40 = vector.load %arg5[%c0_28, %c0_29, %c0_30] : memref<3x8x128xf32, #tpu.memory_space<vmem>>, vector<3x8x128xf32>
      tpu.vector_store %arg5[%c0_28, %c0_29, %c0_30], %39 {strides = array<i32>} : memref<3x8x128xf32, #tpu.memory_space<vmem>>, vector<3x8x128xf32>,
    } else {
    }
    %c0 = arith.constant 0 : index
    %c0_1 = arith.constant 0 : index
    %3 = vector.load %arg2[%c0, %c0_1] : memref<16x128xf32, #tpu.memory_space<vmem>>, vector<16x128xf32>
    %cst = arith.constant 5.000000e-01 : f32
    %4 = vector.broadcast %cst : f32 to vector<16x128xf32>
    %5 = arith.mulf %4, %3 : vector<16x128xf32>
    %6 = math.tanh %5 : vector<16x128xf32>
    %cst_2 = arith.constant 5.000000e-01 : f32
    %7 = vector.broadcast %cst_2 : f32 to vector<16x128xf32>
    %8 = arith.mulf %7, %6 : vector<16x128xf32>
    %cst_3 = arith.constant 5.000000e-01 : f32
    %9 = vector.broadcast %cst_3 : f32 to vector<16x128xf32>
    %10 = arith.addf %8, %9 : vector<16x128xf32>
    %c0_4 = arith.constant 0 : index
    %c0_5 = arith.constant 0 : index
    %11 = vector.load %arg3[%c0_4, %c0_5] : memref<16x128xf32, #tpu.memory_space<vmem>>, vector<16x128xf32>
    %12 = vector.shape_cast %10 : vector<16x128xf32> to vector<2x8x128xf32>
    %13 = vector.shape_cast %11 : vector<16x128xf32> to vector<2x8x128xf32>
    %c0_6 = arith.constant 0 : index
    %c0_7 = arith.constant 0 : index
    %c0_8 = arith.constant 0 : index
    %14 = vector.load %arg5[%c0_6, %c0_7, %c0_8] : memref<3x8x128xf32, #tpu.memory_space<vmem>>, vector<1x8x128xf32>
    %15 = vector.shape_cast %14 : vector<1x8x128xf32> to vector<8x128xf32>
    %16 = arith.mulf %12, %13 : vector<2x8x128xf32>
    %cst_9 = arith.constant dense<0.000000e+00> : vector<8x128xf32>
    %17 = vector.multi_reduction <add>, %16, %cst_9 [0] : vector<2x8x128xf32> to vector<8x128xf32>
    %18 = arith.addf %15, %17 : vector<8x128xf32>
    %c0_10 = arith.constant 0 : index
    %c0_11 = arith.constant 0 : index
    %c0_12 = arith.constant 0 : index
    %19 = vector.load %arg5[%c0_10, %c0_11, %c0_12] : memref<3x8x128xf32, #tpu.memory_space<vmem>>, vector<1x8x128xf32>
    %20 = vector.shape_cast %19 : vector<1x8x128xf32> to vector<8x128xf32>
    %21 = vector.shape_cast %18 : vector<8x128xf32> to vector<1x8x128xf32>
    tpu.vector_store %arg5[%c0_10, %c0_11, %c0_12], %21 {strides = array<i32>} : memref<3x8x128xf32, #tpu.memory_space<vmem>>, vector<1x8x128xf32>,
    %c1 = arith.constant 1 : index
    %c0_13 = arith.constant 0 : index
    %c0_14 = arith.constant 0 : index
    %22 = vector.load %arg5[%c1, %c0_13, %c0_14] : memref<3x8x128xf32, #tpu.memory_space<vmem>>, vector<1x8x128xf32>
    %23 = vector.shape_cast %22 : vector<1x8x128xf32> to vector<8x128xf32>
    %cst_15 = arith.constant dense<0.000000e+00> : vector<8x128xf32>
    %24 = vector.multi_reduction <add>, %12, %cst_15 [0] : vector<2x8x128xf32> to vector<8x128xf32>
    %25 = arith.addf %23, %24 : vector<8x128xf32>
    %c1_16 = arith.constant 1 : index
    %c0_17 = arith.constant 0 : index
    %c0_18 = arith.constant 0 : index
    %26 = vector.load %arg5[%c1_16, %c0_17, %c0_18] : memref<3x8x128xf32, #tpu.memory_space<vmem>>, vector<1x8x128xf32>
    %27 = vector.shape_cast %26 : vector<1x8x128xf32> to vector<8x128xf32>
    %28 = vector.shape_cast %25 : vector<8x128xf32> to vector<1x8x128xf32>
    tpu.vector_store %arg5[%c1_16, %c0_17, %c0_18], %28 {strides = array<i32>} : memref<3x8x128xf32, #tpu.memory_space<vmem>>, vector<1x8x128xf32>,
    %c2 = arith.constant 2 : index
    %c0_19 = arith.constant 0 : index
    %c0_20 = arith.constant 0 : index
    %29 = vector.load %arg5[%c2, %c0_19, %c0_20] : memref<3x8x128xf32, #tpu.memory_space<vmem>>, vector<1x8x128xf32>
    %30 = vector.shape_cast %29 : vector<1x8x128xf32> to vector<8x128xf32>
    %cst_21 = arith.constant dense<0.000000e+00> : vector<8x128xf32>
    %31 = vector.multi_reduction <add>, %13, %cst_21 [0] : vector<2x8x128xf32> to vector<8x128xf32>
    %32 = arith.addf %30, %31 : vector<8x128xf32>
    %c2_22 = arith.constant 2 : index
    %c0_23 = arith.constant 0 : index
    %c0_24 = arith.constant 0 : index
    %33 = vector.load %arg5[%c2_22, %c0_23, %c0_24] : memref<3x8x128xf32, #tpu.memory_space<vmem>>, vector<1x8x128xf32>
    %34 = vector.shape_cast %33 : vector<1x8x128xf32> to vector<8x128xf32>
    %35 = vector.shape_cast %32 : vector<8x128xf32> to vector<1x8x128xf32>
    tpu.vector_store %arg5[%c2_22, %c0_23, %c0_24], %35 {strides = array<i32>} : memref<3x8x128xf32, #tpu.memory_space<vmem>>, vector<1x8x128xf32>,
    %c0_i32_25 = arith.constant 0 : i32
    %36 = arith.cmpi eq, %arg1, %c0_i32_25 : i32
    %37 = arith.extui %36 : i1 to i32
    %c0_i32_26 = arith.constant 0 : i32
    %38 = arith.cmpi ne, %37, %c0_i32_26 : i32
    scf.if %38 {
      %c0_27 = arith.constant 0 : index
      %c0_28 = arith.constant 0 : index
      %c0_29 = arith.constant 0 : index
      %39 = vector.load %arg5[%c0_27, %c0_28, %c0_29] : memref<3x8x128xf32, #tpu.memory_space<vmem>>, vector<3x8x128xf32>
      %cst_30 = arith.constant dense<0.000000e+00> : vector<3x128xf32>
      %40 = vector.multi_reduction <add>, %39, %cst_30 [1] : vector<3x8x128xf32> to vector<3x128xf32>
      %41 = vector.shape_cast %40 : vector<3x128xf32> to vector<1x3x128xf32>
      %c0_31 = arith.constant 0 : index
      %c0_32 = arith.constant 0 : index
      %c0_33 = arith.constant 0 : index
      %42 = vector.load %arg4[%c0_31, %c0_32, %c0_33] : memref<1x3x128xf32, #tpu.memory_space<vmem>>, vector<1x3x128xf32>
      tpu.vector_store %arg4[%c0_31, %c0_32, %c0_33], %41 {strides = array<i32>} : memref<1x3x128xf32, #tpu.memory_space<vmem>>, vector<1x3x128xf32>,
    } else {
    }
    return
  }
  func.func @transform_0(%arg0: i32, %arg1: i32) -> (i32, i32) {
    %c1_i32 = arith.constant 1 : i32
    %0 = arith.muli %arg0, %c1_i32 : i32
    %1 = arith.addi %0, %arg1 : i32
    %c0_i32 = arith.constant 0 : i32
    %2 = arith.minsi %1, %c0_i32 : i32
    %c0_i32_0 = arith.constant 0 : i32
    %c0_i32_1 = arith.constant 0 : i32
    return %2, %c0_i32_0 : i32, i32
  }
  func.func @transform_1(%arg0: i32, %arg1: i32) -> (i32, i32) {
    %c1_i32 = arith.constant 1 : i32
    %0 = arith.muli %arg0, %c1_i32 : i32
    %1 = arith.addi %0, %arg1 : i32
    %c0_i32 = arith.constant 0 : i32
    %2 = arith.minsi %1, %c0_i32 : i32
    %c0_i32_0 = arith.constant 0 : i32
    %c0_i32_1 = arith.constant 0 : i32
    return %2, %c0_i32_0 : i32, i32
  }
  func.func @transform_2(%arg0: i32, %arg1: i32) -> (i32, i32, i32) {
    %c0_i32 = arith.constant 0 : i32
    %c0_i32_0 = arith.constant 0 : i32
    %c0_i32_1 = arith.constant 0 : i32
    return %arg0, %c0_i32, %c0_i32_0 : i32, i32, i32
  }
}

</mosaic_0001>

<bundles_post_ra>
// kernel: tpu_custom_call.1
= control target key start
LH: loop header
LB: loop body
LE: loop exit
PB: predicated region body
PF: predicated region fallthrough
CT: control target
= control target key end

     0   :  { %7 = vsyncpa [#allocation4], 0  ;;  %s217_s0 = inlined_call_operand.hbm [shape: f32[16,128], index: 0, kind: input, shape index: {}]   ;;  %s218_s1 = inlined_call_operand.hbm [shape: f32[16,128], index: 1, kind: input, shape index: {}]   ;;  %s219_s2 = inlined_call_operand.vmem [shape: f32[1,3,128], index: 2, kind: output, shape index: {}]  }
   0x1   :  { %8 = vsyncpa [#allocation6], 0  ;;  %s189_s9 = smov [#allocation3]  }
   0x2   :  { %s20_s10 = sshll.u32 %s189_s9, 4  ;;  %s21_s10 = int_to_ptr.vmem [resolvable:$true] %s20_s10 }
   0x3   :  { %s153_s11 = scalar_lea.vmem %s21_s10, 256  ;;  %p158_p1 = scmp.lt.s32.totalorder %s21_s10, %s21_s10 }
   0x4   :  { %p154_p0 = scmp.ne.s32.totalorder %s21_s10, %s153_s11  ;;  %p159_p2 = scmp.lt.s32.totalorder %s153_s11, %s153_s11 }
   0x6   :  { %p160_p3 = por %p159_p2, %p158_p1 }
   0x8   :  { %p161_p4 = pnand %p160_p3, %p154_p0 }
   0xa   :  { %164 = shalt.err (!%p161_p4)
}
   0xb   :  { %s190_s12 = smov 128   ;;  %s191_s13 = smov 8  }
   0xc   :  { %26 = dma.hbm_to_vmem [thread:$0]  %s217_s0, 256, %s21_s10, [#allocation4], %s190_s12, %s190_s12, %s191_s13  }
   0xd   :  { %s192_s16 = smov [#allocation5]  }
   0xe   :  { %s38_s17 = sshll.u32 %s192_s16, 4  ;;  %s39_s17 = int_to_ptr.vmem [resolvable:$true] %s38_s17 }
   0xf   :  { %s173_s18 = scalar_lea.vmem %s39_s17, 256  ;;  %p178_p6 = scmp.lt.s32.totalorder %s39_s17, %s39_s17 }
  0x10   :  { %p174_p5 = scmp.ne.s32.totalorder %s39_s17, %s173_s18  ;;  %p179_p7 = scmp.lt.s32.totalorder %s173_s18, %s173_s18 }
  0x12   :  { %p180_p8 = por %p179_p7, %p178_p6 }
  0x14   :  { %p181_p9 = pnand %p180_p8, %p174_p5 }
  0x16   :  { %184 = shalt.err (!%p181_p9)
}
  0x17   :  { %44 = dma.hbm_to_vmem [thread:$0]  %s218_s1, 256, %s39_s17, [#allocation6], %s190_s12, %s190_s12, %s191_s13  }
  0x18   :  { %185 = dma.done.wait [#allocation4], 256  }
  0x19   :  { %186 = vsyncadd [#allocation4], 4294967040 }
  0x1a   :  { %187 = dma.done.wait [#allocation6], 256  }
  0x1b   :  { %188 = vsyncadd [#allocation6], 4294967040  ;;  %v66_v0 = vld [vmem:[#allocation3] sm:$0xff]  ;;  %v67_v1 = vld [vmem:[#allocation3 + $0x8] sm:$0xff]  ;;  %vm121_vm0 = vcmask 1041409   ;;  %vm123_vm1 = vcmask 1042434  }
  0x1c   :  { %v68_v2 = vmul.f32 0.5, %v66_v0  ;;  %v69_v3 = vmul.f32 0.5, %v67_v1  ;;  %v76_v4 = vld [vmem:[#allocation5] sm:$0xff]  ;;  %v77_v5 = vld [vmem:[#allocation5 + $0x8] sm:$0xff] }
  0x1d   :  { %v91_v6 = vadd.f32 %v77_v5, %v76_v4 }
  0x1e   :  { %141 = vtanh.f32 %v68_v2 }
  0x1f   :  { %143 = vtanh.f32 %v69_v3  ;;  %v112_v7 = vrot.slane %v91_v6, 4 }
  0x21   :  { %v113_v13 = vadd.f32 %v112_v7, %v91_v6 }
  0x23   :  { %v114_v18 = vrot.slane %v113_v13, 2 }
  0x25   :  { %v115_v23 = vadd.f32 %v114_v18, %v113_v13 }
  0x27   :  { %v116_v28 = vrot.slane %v115_v23, 1 }
  0x29   :  { %v117_v33 = vadd.f32 %v116_v28, %v115_v23 }
  0x2b   :  { %v142_v8 = vpop.eup %141 }
  0x2c   :  { %v144_v9 = vpop.eup %143  ;;  %v72_v10 = vmul.f32 0.5, %v142_v8 }
  0x2d   :  { %v73_v11 = vmul.f32 0.5, %v144_v9 }
  0x2e   :  { %v74_v12 = vadd.f32 0.5, %v72_v10 }
  0x2f   :  { %v75_v14 = vadd.f32 0.5, %v73_v11 }
  0x30   :  { %v79_v15 = vmul.f32 %v76_v4, %v74_v12 }
  0x31   :  { %v80_v16 = vmul.f32 %v77_v5, %v75_v14  ;;  %v86_v17 = vadd.f32 %v75_v14, %v74_v12 }
  0x33   :  { %v81_v19 = vadd.f32 %v80_v16, %v79_v15  ;;  %v106_v20 = vrot.slane %v86_v17, 4 }
  0x35   :  { %v100_v21 = vrot.slane %v81_v19, 4  ;;  %v107_v22 = vadd.f32 %v106_v20, %v86_v17 }
  0x37   :  { %v101_v24 = vadd.f32 %v100_v21, %v81_v19  ;;  %v108_v25 = vrot.slane %v107_v22, 2 }
  0x39   :  { %v102_v26 = vrot.slane %v101_v24, 2  ;;  %v109_v27 = vadd.f32 %v108_v25, %v107_v22 }
  0x3b   :  { %v103_v29 = vadd.f32 %v102_v26, %v101_v24  ;;  %v110_v30 = vrot.slane %v109_v27, 1 }
  0x3d   :  { %v104_v31 = vrot.slane %v103_v29, 1  ;;  %v111_v32 = vadd.f32 %v110_v30, %v109_v27 }
  0x3f   :  { %v105_v34 = vadd.f32 %v104_v31, %v103_v29 }
  0x41   :  { %v122_v35 = vsel %vm121_vm0, %v111_v32, %v105_v34 }
  0x42   :  { %v124_v36 = vsel %vm123_vm1, %v117_v33, %v122_v35 }
  0x43   :  { %126 = vst [vmem:[%s219_s2] sm:$0x7] %v124_v36 }
  0x44   :  { %131 = vsyncpa [#allocation4], 1 }
  0x45   :  { %132 = vsyncpa [#allocation6], 1 }

</bundles_post_ra>
